<compile_context>
chip_gen: v6e
topology: v6e:2x2x1
jax: 0.10.0
libtpu: 0.0.40
codegen_flags: <defaults>
</compile_context>

<pallas_src>
import math
import functools

import jax
import jax.numpy as jnp
from jax import lax
from jax.experimental import pallas as pl
from jax.experimental.pallas import tpu as pltpu


def _round_up(x, m):
    return ((x + m - 1) // m) * m


# ---------------------------------------------------------------------------
# Q/K/V projection kernel (tiled over rows; weights are small full blocks)
# ---------------------------------------------------------------------------
def _qkv_proj_kernel(x_ref, wq_ref, wk_ref, wv_ref, q_ref, k_ref, v_ref, *, scale):
    x = x_ref[...]
    # Native-dtype MXU operands, f32 accumulate.  Scale folded into Q once.
    q = jnp.dot(x, wq_ref[...], preferred_element_type=jnp.float32) * scale
    k = jnp.dot(x, wk_ref[...], preferred_element_type=jnp.float32)
    v = jnp.dot(x, wv_ref[...], preferred_element_type=jnp.float32)
    q_ref[...] = q.astype(q_ref.dtype)
    k_ref[...] = k.astype(k_ref.dtype)
    v_ref[...] = v.astype(v_ref.dtype)


# ---------------------------------------------------------------------------
# Flash-attention kernel (online softmax over the full N = batch*seq kv range)
# ---------------------------------------------------------------------------
def _flash_attn_kernel(q_ref, k_ref, v_ref, o_ref, m_sc, l_sc, acc_sc,
                       *, n_valid, block_kv):
    ki = pl.program_id(1)

    @pl.when(ki == 0)
    def _init():
        m_sc[...] = jnp.full_like(m_sc, -jnp.inf)
        l_sc[...] = jnp.zeros_like(l_sc)
        acc_sc[...] = jnp.zeros_like(acc_sc)

    q = q_ref[...]          # (tq, Ep), already scaled by 1/sqrt(emsize)
    k = k_ref[...]          # (tk, Ep)

    # Contract last dims directly -> no explicit K transpose materialized.
    s = lax.dot_general(q, k, (((1,), (1,)), ((), ())),
                        preferred_element_type=jnp.float32)   # (tq, tk)

    # Mask padded kv rows (padding from rounding N up to the tile size).
    kv_idx = ki * block_kv + lax.broadcasted_iota(jnp.int32, s.shape, 1)
    s = jnp.where(kv_idx < n_valid, s, -jnp.inf)

    m_prev = m_sc[...]
    m_new = jnp.maximum(m_prev, jnp.max(s, axis=-1, keepdims=True))
    alpha = jnp.exp(m_prev - m_new)
    p = jnp.exp(s - m_new)

    l_sc[...] = alpha * l_sc[...] + jnp.sum(p, axis=-1, keepdims=True)
    acc_sc[...] = alpha * acc_sc[...] + jnp.dot(
        p.astype(v_ref.dtype), v_ref[...], preferred_element_type=jnp.float32)
    m_sc[...] = m_new

    @pl.when(ki == pl.num_programs(1) - 1)
    def _finalize():
        # Normalization folded into the finalize step (done once per q tile,
        # so an exact reciprocal is essentially free here).
        inv_l = pl.reciprocal(l_sc[...], approx=False)
        o_ref[...] = (acc_sc[...] * inv_l).astype(o_ref.dtype)


# ---------------------------------------------------------------------------
# Wrapper
# ---------------------------------------------------------------------------
def self_attention(x, wq, wk, wv, mask=None):
    """x: (batch, seq, emsize); wq/wk/wv: (emsize, emsize) PyTorch-style
    nn.Linear weights (out, in). `mask` is accepted but unused (matches ref)."""
    del mask  # unused by the reference forward()
    batch, seq, e = x.shape
    n = batch * seq
    dtype = x.dtype
    itemsize = jnp.dtype(dtype).itemsize

    # Lane-dense padding: E to multiples of 128, N to a multiple of the tile.
    e_pad = _round_up(e, 128)
    tile = min(256, _round_up(n, 8))        # 256 tiles for large N, small N fits one
    n_pad = _round_up(n, tile)
    n_q_tiles = n_pad // tile
    n_kv_tiles = n_pad // tile

    x_flat = x.reshape(n, e)
    x_p = jnp.pad(x_flat, ((0, n_pad - n), (0, e_pad - e)))
    # nn.Linear computes x @ W.T -> pre-transpose and zero-pad the weights.
    wq_p = jnp.pad(wq.T, ((0, e_pad - e), (0, e_pad - e)))
    wk_p = jnp.pad(wk.T, ((0, e_pad - e), (0, e_pad - e)))
    wv_p = jnp.pad(wv.T, ((0, e_pad - e), (0, e_pad - e)))

    scale = 1.0 / math.sqrt(e)

    # ---------------- Q/K/V projection (tiled over rows) ----------------
    row_spec = pl.BlockSpec((tile, e_pad), lambda i: (i, 0))
    w_spec = pl.BlockSpec((e_pad, e_pad), lambda i: (0, 0))

    proj_cost = pl.CostEstimate(
        flops=3 * 2 * n_pad * e_pad * e_pad,
        transcendentals=0,
        bytes_accessed=itemsize * (4 * n_pad * e_pad + 3 * e_pad * e_pad),
    )

    q_p, k_p, v_p = pl.pallas_call(
        functools.partial(_qkv_proj_kernel, scale=scale),
        out_shape=(
            jax.ShapeDtypeStruct((n_pad, e_pad), dtype),
            jax.ShapeDtypeStruct((n_pad, e_pad), dtype),
            jax.ShapeDtypeStruct((n_pad, e_pad), dtype),
        ),
        grid_spec=pltpu.PrefetchScalarGridSpec(
            num_scalar_prefetch=0,
            grid=(n_q_tiles,),
            in_specs=[row_spec, w_spec, w_spec, w_spec],
            out_specs=[row_spec, row_spec, row_spec],
        ),
        compiler_params=pltpu.CompilerParams(
            dimension_semantics=("parallel",)),
        cost_estimate=proj_cost,
    )(x_p, wq_p, wk_p, wv_p)

    # ---------------- Flash attention over all N = batch*seq rows ----------------
    attn_cost = pl.CostEstimate(
        flops=4 * n_pad * n_pad * e_pad,
        transcendentals=n_pad * n_pad,
        bytes_accessed=itemsize * 4 * n_pad * e_pad,
    )

    out_p = pl.pallas_call(
        functools.partial(_flash_attn_kernel, n_valid=n, block_kv=tile),
        out_shape=jax.ShapeDtypeStruct((n_pad, e_pad), dtype),
        grid_spec=pltpu.PrefetchScalarGridSpec(
            num_scalar_prefetch=0,
            grid=(n_q_tiles, n_kv_tiles),
            in_specs=[
                pl.BlockSpec((tile, e_pad), lambda qi, ki: (qi, 0)),   # Q
                pl.BlockSpec((tile, e_pad), lambda qi, ki: (ki, 0)),   # K
                pl.BlockSpec((tile, e_pad), lambda qi, ki: (ki, 0)),   # V
            ],
            out_specs=pl.BlockSpec((tile, e_pad), lambda qi, ki: (qi, 0)),
            scratch_shapes=[
                pltpu.VMEM((tile, 1), jnp.float32),      # running max m
                pltpu.VMEM((tile, 1), jnp.float32),      # running sum l
                pltpu.VMEM((tile, e_pad), jnp.float32),  # output accumulator
            ],
        ),
        compiler_params=pltpu.CompilerParams(
            dimension_semantics=("parallel", "arbitrary")),
        cost_estimate=attn_cost,
    )(q_p, k_p, v_p)

    return out_p[:n, :e].reshape(batch, seq, e)


# ---------------------------------------------------------------------------
# Pure-JAX reference matching the PyTorch forward exactly.
# ---------------------------------------------------------------------------
def _reference(x, wq, wk, wv):
    batch, seq, emsize = x.shape
    v = x @ wv.T
    k = x @ wk.T
    q = x @ wq.T
    n = batch * seq
    v = v.reshape(n, emsize)
    k = k.reshape(n, emsize)
    q = q.reshape(n, emsize)
    sim = q @ k.T
    attn = jax.nn.softmax(sim / math.sqrt(emsize), axis=-1)
    out = attn @ v
    return out.reshape(batch, seq, emsize)


if __name__ == "__main__":
    batch, seq, emsize, heads = 2, 8, 32, 4  # heads unused in forward (as in ref)

    key = jax.random.PRNGKey(0)
    kx, kq, kk, kv, km = jax.random.split(key, 5)

    x = jax.random.normal(kx, (batch, seq, emsize), dtype=jnp.float32)
    # nn.Linear default init ~ U(-1/sqrt(in), 1/sqrt(in)); deterministic here
    bound = 1.0 / math.sqrt(emsize)
    wq = jax.random.uniform(kq, (emsize, emsize), jnp.float32, -bound, bound)
    wk = jax.random.uniform(kk, (emsize, emsize), jnp.float32, -bound, bound)
    wv = jax.random.uniform(kv, (emsize, emsize), jnp.float32, -bound, bound)
    mask = jnp.ones((batch, seq), dtype=jnp.float32)  # accepted but unused

    out = self_attention(x, wq, wk, wv, mask)
    out = jax.block_until_ready(out)

    ref = _reference(x, wq, wk, wv)
    assert out.shape == (batch, seq, emsize)
    assert jnp.allclose(out, ref, atol=1e-3, rtol=1e-3), "mismatch vs reference"

    print("KERNEL_OK")
</pallas_src>

<mosaic_0001>
module attributes {stable_mosaic.version = 11 : i64} {
  func.func @_qkv_proj_kernel(%arg0: i32, %arg1: memref<16x128xf32, #tpu.memory_space<vmem>>, %arg2: memref<128x128xf32, #tpu.memory_space<vmem>>, %arg3: memref<128x128xf32, #tpu.memory_space<vmem>>, %arg4: memref<128x128xf32, #tpu.memory_space<vmem>>, %arg5: memref<16x128xf32, #tpu.memory_space<vmem>>, %arg6: memref<16x128xf32, #tpu.memory_space<vmem>>, %arg7: memref<16x128xf32, #tpu.memory_space<vmem>>) attributes {dimension_semantics = [#tpu.dimension_semantics<parallel>], iteration_bounds = array<i64: 1>, scalar_prefetch = 0 : i64, scratch_operands = 0 : i64, tpu.core_type = #tpu.core_type<tc>, window_params = [{transform_indices = @transform_0, window_bounds = array<i64: 16, 128>}, {pipeline_mode = #tpu.pipeline_mode<synchronous>, transform_indices = @transform_1, window_bounds = array<i64: 128, 128>}, {pipeline_mode = #tpu.pipeline_mode<synchronous>, transform_indices = @transform_2, window_bounds = array<i64: 128, 128>}, {pipeline_mode = #tpu.pipeline_mode<synchronous>, transform_indices = @transform_3, window_bounds = array<i64: 128, 128>}, {transform_indices = @transform_4, window_bounds = array<i64: 16, 128>}, {transform_indices = @transform_5, window_bounds = array<i64: 16, 128>}, {transform_indices = @transform_6, window_bounds = array<i64: 16, 128>}]} {
    %c0 = arith.constant 0 : index
    %c0_0 = arith.constant 0 : index
    %0 = vector.load %arg1[%c0, %c0_0] : memref<16x128xf32, #tpu.memory_space<vmem>>, vector<16x128xf32>
    %c0_1 = arith.constant 0 : index
    %c0_2 = arith.constant 0 : index
    %1 = vector.load %arg2[%c0_1, %c0_2] : memref<128x128xf32, #tpu.memory_space<vmem>>, vector<128x128xf32>
    %cst = arith.constant dense<0.000000e+00> : vector<16x128xf32>
    %2 = tpu.matmul %0, %1, %cst {dimension_numbers = #tpu.dot_dimension_numbers<[1], [0], [0], [1], [0, 0, 1, 1], [], []>} : vector<16x128xf32>, vector<128x128xf32>, vector<16x128xf32> -> vector<16x128xf32>
    %cst_3 = arith.constant 0.176776692 : f32
    %3 = vector.broadcast %cst_3 : f32 to vector<16x128xf32>
    %4 = arith.mulf %2, %3 : vector<16x128xf32>
    %c0_4 = arith.constant 0 : index
    %c0_5 = arith.constant 0 : index
    %5 = vector.load %arg3[%c0_4, %c0_5] : memref<128x128xf32, #tpu.memory_space<vmem>>, vector<128x128xf32>
    %cst_6 = arith.constant dense<0.000000e+00> : vector<16x128xf32>
    %6 = tpu.matmul %0, %5, %cst_6 {dimension_numbers = #tpu.dot_dimension_numbers<[1], [0], [0], [1], [0, 0, 1, 1], [], []>} : vector<16x128xf32>, vector<128x128xf32>, vector<16x128xf32> -> vector<16x128xf32>
    %c0_7 = arith.constant 0 : index
    %c0_8 = arith.constant 0 : index
    %7 = vector.load %arg4[%c0_7, %c0_8] : memref<128x128xf32, #tpu.memory_space<vmem>>, vector<128x128xf32>
    %cst_9 = arith.constant dense<0.000000e+00> : vector<16x128xf32>
    %8 = tpu.matmul %0, %7, %cst_9 {dimension_numbers = #tpu.dot_dimension_numbers<[1], [0], [0], [1], [0, 0, 1, 1], [], []>} : vector<16x128xf32>, vector<128x128xf32>, vector<16x128xf32> -> vector<16x128xf32>
    %c0_10 = arith.constant 0 : index
    %c0_11 = arith.constant 0 : index
    %9 = vector.load %arg5[%c0_10, %c0_11] : memref<16x128xf32, #tpu.memory_space<vmem>>, vector<16x128xf32>
    tpu.vector_store %arg5[%c0_10, %c0_11], %4 {strides = array<i32>} : memref<16x128xf32, #tpu.memory_space<vmem>>, vector<16x128xf32>,
    %c0_12 = arith.constant 0 : index
    %c0_13 = arith.constant 0 : index
    %10 = vector.load %arg6[%c0_12, %c0_13] : memref<16x128xf32, #tpu.memory_space<vmem>>, vector<16x128xf32>
    tpu.vector_store %arg6[%c0_12, %c0_13], %6 {strides = array<i32>} : memref<16x128xf32, #tpu.memory_space<vmem>>, vector<16x128xf32>,
    %c0_14 = arith.constant 0 : index
    %c0_15 = arith.constant 0 : index
    %11 = vector.load %arg7[%c0_14, %c0_15] : memref<16x128xf32, #tpu.memory_space<vmem>>, vector<16x128xf32>
    tpu.vector_store %arg7[%c0_14, %c0_15], %8 {strides = array<i32>} : memref<16x128xf32, #tpu.memory_space<vmem>>, vector<16x128xf32>,
    return
  }
  func.func @transform_0(%arg0: i32) -> (i32, i32) {
    %c0_i32 = arith.constant 0 : i32
    %c0_i32_0 = arith.constant 0 : i32
    return %arg0, %c0_i32 : i32, i32
  }
  func.func @transform_1(%arg0: i32) -> (i32, i32) {
    %c0_i32 = arith.constant 0 : i32
    %c0_i32_0 = arith.constant 0 : i32
    %c0_i32_1 = arith.constant 0 : i32
    return %c0_i32, %c0_i32_0 : i32, i32
  }
  func.func @transform_2(%arg0: i32) -> (i32, i32) {
    %c0_i32 = arith.constant 0 : i32
    %c0_i32_0 = arith.constant 0 : i32
    %c0_i32_1 = arith.constant 0 : i32
    return %c0_i32, %c0_i32_0 : i32, i32
  }
  func.func @transform_3(%arg0: i32) -> (i32, i32) {
    %c0_i32 = arith.constant 0 : i32
    %c0_i32_0 = arith.constant 0 : i32
    %c0_i32_1 = arith.constant 0 : i32
    return %c0_i32, %c0_i32_0 : i32, i32
  }
  func.func @transform_4(%arg0: i32) -> (i32, i32) {
    %c0_i32 = arith.constant 0 : i32
    %c0_i32_0 = arith.constant 0 : i32
    return %arg0, %c0_i32 : i32, i32
  }
  func.func @transform_5(%arg0: i32) -> (i32, i32) {
    %c0_i32 = arith.constant 0 : i32
    %c0_i32_0 = arith.constant 0 : i32
    return %arg0, %c0_i32 : i32, i32
  }
  func.func @transform_6(%arg0: i32) -> (i32, i32) {
    %c0_i32 = arith.constant 0 : i32
    %c0_i32_0 = arith.constant 0 : i32
    return %arg0, %c0_i32 : i32, i32
  }
}

</mosaic_0001>

<bundles_post_ra>
// kernel: tpu_custom_call.1
= control target key start
LH: loop header
LB: loop body
LE: loop exit
PB: predicated region body
PF: predicated region fallthrough
CT: control target
= control target key end

     0   :  { %12 = vsyncpa [#allocation3], 0  ;;  %s824_s0 = inlined_call_operand.hbm [shape: f32[16,128], index: 0, kind: input, shape index: {}]   ;;  %s825_s1 = inlined_call_operand.hbm [shape: f32[128,128], index: 1, kind: input, shape index: {}]   ;;  %s826_s2 = inlined_call_operand.hbm [shape: f32[128,128], index: 2, kind: input, shape index: {}]   ;;  %s827_s3 = inlined_call_operand.hbm [shape: f32[128,128], index: 3, kind: input, shape index: {}]   ;;  %s828_s4 = inlined_call_operand.hbm [shape: f32[16,128], index: 4, kind: output, shape index: {0}]   ;;  %s829_s5 = inlined_call_operand.hbm [shape: f32[16,128], index: 5, kind: output, shape index: {1}]   ;;  %s830_s6 = inlined_call_operand.hbm [shape: f32[16,128], index: 6, kind: output, shape index: {2}]  }
   0x1   :  { %13 = vsyncpa [#allocation6], 0 }
   0x2   :  { %14 = vsyncpa [#allocation9], 0 }
   0x3   :  { %15 = vsyncpa [#allocation4], 0 }
   0x4   :  { %16 = vsyncpa [#allocation12], 0  ;;  %s728_s21 = smov [#allocation5]   ;;  %s729_s23 = smov [#allocation2]  }
   0x5   :  { %s34_s22 = sshll.u32 %s728_s21, 4  ;;  %s22_s24 = sshll.u32 %s729_s23, 4  ;;  %s35_s22 = int_to_ptr.vmem [resolvable:$true] %s34_s22  ;;  %s23_s24 = int_to_ptr.vmem [resolvable:$true] %s22_s24 }
   0x6   :  { %s586_s25 = scalar_lea.vmem %s35_s22, 2048  ;;  %p591_p1 = scmp.lt.s32.totalorder %s35_s22, %s35_s22 }
   0x7   :  { %p587_p0 = scmp.ne.s32.totalorder %s35_s22, %s586_s25  ;;  %p592_p2 = scmp.lt.s32.totalorder %s586_s25, %s586_s25 }
   0x9   :  { %p593_p3 = por %p592_p2, %p591_p1 }
   0xb   :  { %p594_p4 = pnand %p593_p3, %p587_p0 }
   0xd   :  { %597 = shalt.err (!%p594_p4)
}
   0xe   :  { %s730_s26 = smov 128   ;;  %s731_s27 = smov 8  }
   0xf   :  { %40 = dma.hbm_to_vmem [thread:$0]  %s825_s1, 2048, %s35_s22, [#allocation6], %s730_s26, %s730_s26, %s731_s27  }
  0x10   :  { %s606_s30 = scalar_lea.vmem %s23_s24, 256  ;;  %p611_p6 = scmp.lt.s32.totalorder %s23_s24, %s23_s24 }
  0x11   :  { %p607_p5 = scmp.ne.s32.totalorder %s23_s24, %s606_s30  ;;  %p612_p7 = scmp.lt.s32.totalorder %s606_s30, %s606_s30 }
  0x13   :  { %p613_p8 = por %p612_p7, %p611_p6 }
  0x15   :  { %p614_p9 = pnand %p613_p8, %p607_p5 }
  0x17   :  { %617 = shalt.err (!%p614_p9)
}
  0x18   :  { %28 = dma.hbm_to_vmem [thread:$0]  %s824_s0, 256, %s23_s24, [#allocation3], %s730_s26, %s730_s26, %s731_s27  }
  0x19   :  { %s732_s9 = smov [#allocation7]   ;;  %s733_s11 = smov [#allocation8]  }
  0x1a   :  { %s46_s10 = sshll.u32 %s732_s9, 4  ;;  %s58_s12 = sshll.u32 %s733_s11, 4  ;;  %s47_s10 = int_to_ptr.vmem [resolvable:$true] %s46_s10  ;;  %s59_s12 = int_to_ptr.vmem [resolvable:$true] %s58_s12 }
  0x1b   :  { %s626_s1 = scalar_lea.vmem %s47_s10, 2048  ;;  %p631_p11 = scmp.lt.s32.totalorder %s47_s10, %s47_s10 }
  0x1c   :  { %p627_p10 = scmp.ne.s32.totalorder %s47_s10, %s626_s1  ;;  %p632_p12 = scmp.lt.s32.totalorder %s626_s1, %s626_s1 }
  0x1e   :  { %p633_p13 = por %p632_p12, %p631_p11 }
  0x20   :  { %p634_p0 = pnand %p633_p13, %p627_p10 }
  0x22   :  { %637 = shalt.err (!%p634_p0)
}
  0x23   :  { %52 = dma.hbm_to_vmem [thread:$0]  %s826_s2, 2048, %s47_s10, [#allocation6], %s730_s26, %s730_s26, %s731_s27  }
  0x24   :  { %s646_s0 = scalar_lea.vmem %s59_s12, 2048  ;;  %p651_p2 = scmp.lt.s32.totalorder %s59_s12, %s59_s12 }
  0x25   :  { %p647_p1 = scmp.ne.s32.totalorder %s59_s12, %s646_s0  ;;  %p652_p3 = scmp.lt.s32.totalorder %s646_s0, %s646_s0 }
  0x27   :  { %p653_p4 = por %p652_p3, %p651_p2 }
  0x29   :  { %p654_p5 = pnand %p653_p4, %p647_p1 }
  0x2b   :  { %657 = shalt.err (!%p654_p5)
}
  0x2c   :  { %64 = dma.hbm_to_vmem [thread:$0]  %s827_s3, 2048, %s59_s12, [#allocation9], %s730_s26, %s730_s26, %s731_s27  }
  0x2d   :  { %718 = dma.done.wait [#allocation3], 256  }
  0x2e   :  { %719 = vsyncadd [#allocation3], 4294967040 }
  0x2f   :  { %720 = dma.done.wait [#allocation6], 4096  }
  0x30   :  { %721 = vsyncadd [#allocation6], 4294963200 }
  0x31   :  { %722 = dma.done.wait [#allocation9], 2048  }
  0x32   :  { %723 = vsyncadd [#allocation9], 4294965248  ;;  %v94_v0 = vld [vmem:[#allocation5 + $0x78] sm:$0xff]  ;;  %v93_v1 = vld [vmem:[#allocation5 + $0x70] sm:$0xff]  ;;  %s734_s2 = smov [#allocation10]   ;;  %s735_s17 = smov [#allocation11]  }
  0x33   :  { %464 = vmatprep.subr.mxu0 %v94_v0  ;;  %v92_v2 = vld [vmem:[#allocation5 + $0x68] sm:$0xff]  ;;  %v91_v3 = vld [vmem:[#allocation5 + $0x60] sm:$0xff]  ;;  %v187_v4 = vld [vmem:[#allocation7 + $0x78] sm:$0xff]  ;;  %s365_s3 = sshll.u32 %s734_s2, 4  ;;  %s377_s18 = sshll.u32 %s735_s17, 4  ;;  %s366_s3 = int_to_ptr.vmem [resolvable:$true] %s365_s3  ;;  %s378_s18 = int_to_ptr.vmem [resolvable:$true] %s377_s18 }
  0x34   :  { %465 = vmatpush3.msra.mxu0 %v94_v0  ;;  %v796_v5 = vld [vmem:[#allocation2] sm:$0xff]  ;;  %v90_v6 = vld [vmem:[#allocation5 + $0x58] sm:$0xff]  ;;  %499 = vmatprep.subr.mxu1 %v187_v4  ;;  %v185_v9 = vld [vmem:[#allocation7 + $0x68] sm:$0xff]  ;;  %s658_s19 = scalar_lea.vmem %s366_s3, 256  ;;  %p663_p7 = scmp.lt.s32.totalorder %s366_s3, %s366_s3 }
  0x35   :  { %466 = vmatprep.subr.mxu0 %v93_v1  ;;  %v186_v7 = vld [vmem:[#allocation7 + $0x70] sm:$0xff]  ;;  %500 = vmatpush3.msra.mxu1 %v187_v4  ;;  %v88_v10 = vld [vmem:[#allocation5 + $0x48] sm:$0xff]  ;;  %v184_v11 = vld [vmem:[#allocation7 + $0x60] sm:$0xff]  ;;  %p659_p6 = scmp.ne.s32.totalorder %s366_s3, %s658_s19  ;;  %p664_p8 = scmp.lt.s32.totalorder %s658_s19, %s658_s19 }
  0x36   :  { %467 = vmatpush3.msra.mxu0 %v93_v1  ;;  %v89_v8 = vld [vmem:[#allocation5 + $0x50] sm:$0xff]  ;;  %496 = vmatprep.mubr.f32.mxu0 %v796_v5  ;;  %v87_v12 = vld [vmem:[#allocation5 + $0x40] sm:$0xff]  ;;  %v183_v13 = vld [vmem:[#allocation7 + $0x58] sm:$0xff] }
  0x37   :  { %468 = vmatprep.subr.mxu0 %v92_v2  ;;  %501 = vmatprep.subr.mxu1 %v186_v7  ;;  %v86_v14 = vld [vmem:[#allocation5 + $0x38] sm:$0xff]  ;;  %v182_v15 = vld [vmem:[#allocation7 + $0x50] sm:$0xff]  ;;  %v181_v17 = vld [vmem:[#allocation7 + $0x48] sm:$0xff]  ;;  %p665_p9 = por %p664_p8, %p663_p7 }
  0x38   :  { %469 = vmatpush3.msra.mxu0 %v92_v2  ;;  %502 = vmatpush3.msra.mxu1 %v186_v7  ;;  %v85_v16 = vld [vmem:[#allocation5 + $0x30] sm:$0xff]  ;;  %v84_v18 = vld [vmem:[#allocation5 + $0x28] sm:$0xff]  ;;  %v180_v19 = vld [vmem:[#allocation7 + $0x40] sm:$0xff] }
  0x39   :  { %470 = vmatprep.subr.mxu0 %v91_v3  ;;  %503 = vmatprep.subr.mxu1 %v185_v9  ;;  %v83_v20 = vld [vmem:[#allocation5 + $0x20] sm:$0xff]  ;;  %v179_v21 = vld [vmem:[#allocation7 + $0x38] sm:$0xff]  ;;  %v178_v23 = vld [vmem:[#allocation7 + $0x30] sm:$0xff]  ;;  %p666_p10 = pnand %p665_p9, %p659_p6 }
  0x3a   :  { %471 = vmatpush3.msra.mxu0 %v91_v3  ;;  %504 = vmatpush3.msra.mxu1 %v185_v9  ;;  %v82_v22 = vld [vmem:[#allocation5 + $0x18] sm:$0xff]  ;;  %v81_v24 = vld [vmem:[#allocation5 + $0x10] sm:$0xff]  ;;  %v177_v25 = vld [vmem:[#allocation7 + $0x28] sm:$0xff] }
  0x3b   :  { %472 = vmatprep.subr.mxu0 %v90_v6  ;;  %505 = vmatprep.subr.mxu1 %v184_v11  ;;  %v80_v26 = vld [vmem:[#allocation5 + $0x8] sm:$0xff]  ;;  %v176_v27 = vld [vmem:[#allocation7 + $0x20] sm:$0xff]  ;;  %v175_v29 = vld [vmem:[#allocation7 + $0x18] sm:$0xff] }
  0x3c   :  { %473 = vmatpush3.msra.mxu0 %v90_v6  ;;  %506 = vmatpush3.msra.mxu1 %v184_v11  ;;  %v79_v28 = vld [vmem:[#allocation5] sm:$0xff]  ;;  %v799_v30 = vld [vmem:[#allocation2 + $0x8] sm:$0xff]  ;;  %v174_v32 = vld [vmem:[#allocation7 + $0x10] sm:$0xff] }
  0x3d   :  { %474 = vmatprep.subr.mxu0 %v89_v8  ;;  %507 = vmatprep.subr.mxu1 %v183_v13  ;;  %v278_v31 = vld [vmem:[#allocation8 + $0x78] sm:$0xff]  ;;  %v277_v33 = vld [vmem:[#allocation8 + $0x70] sm:$0xff]  ;;  %v173_v34 = vld [vmem:[#allocation7 + $0x8] sm:$0xff] }
  0x3e   :  { %475 = vmatpush3.msra.mxu0 %v89_v8  ;;  %508 = vmatpush3.msra.mxu1 %v183_v13  ;;  %v276_v35 = vld [vmem:[#allocation8 + $0x68] sm:$0xff]  ;;  %v172_v36 = vld [vmem:[#allocation7] sm:$0xff]  ;;  %v274_v38 = vld [vmem:[#allocation8 + $0x58] sm:$0xff] }
  0x3f   :  { %476 = vmatprep.subr.mxu0 %v88_v10  ;;  %509 = vmatprep.subr.mxu1 %v182_v15  ;;  %v275_v37 = vld [vmem:[#allocation8 + $0x60] sm:$0xff]  ;;  %v273_v39 = vld [vmem:[#allocation8 + $0x50] sm:$0xff]  ;;  %v272_v40 = vld [vmem:[#allocation8 + $0x48] sm:$0xff] }
  0x40   :  { %477 = vmatpush3.msra.mxu0 %v88_v10  ;;  %510 = vmatpush3.msra.mxu1 %v182_v15  ;;  %v271_v41 = vld [vmem:[#allocation8 + $0x40] sm:$0xff]  ;;  %v270_v42 = vld [vmem:[#allocation8 + $0x38] sm:$0xff]  ;;  %v269_v43 = vld [vmem:[#allocation8 + $0x30] sm:$0xff] }
  0x41   :  { %478 = vmatprep.subr.mxu0 %v87_v12  ;;  %511 = vmatprep.subr.mxu1 %v181_v17  ;;  %v268_v44 = vld [vmem:[#allocation8 + $0x28] sm:$0xff]  ;;  %v267_v45 = vld [vmem:[#allocation8 + $0x20] sm:$0xff]  ;;  %v266_v46 = vld [vmem:[#allocation8 + $0x18] sm:$0xff] }
  0x42   :  { %479 = vmatpush3.msra.mxu0 %v87_v12  ;;  %512 = vmatpush3.msra.mxu1 %v181_v17  ;;  %v265_v47 = vld [vmem:[#allocation8 + $0x10] sm:$0xff]  ;;  %v264_v48 = vld [vmem:[#allocation8 + $0x8] sm:$0xff]  ;;  %v263_v49 = vld [vmem:[#allocation8] sm:$0xff] }
  0x43   :  { %480 = vmatprep.subr.mxu0 %v86_v14  ;;  %513 = vmatprep.subr.mxu1 %v180_v19 }
  0x44   :  { %481 = vmatpush3.msra.mxu0 %v86_v14  ;;  %514 = vmatpush3.msra.mxu1 %v180_v19 }
  0x45   :  { %482 = vmatprep.subr.mxu0 %v85_v16  ;;  %515 = vmatprep.subr.mxu1 %v179_v21 }
  0x46   :  { %483 = vmatpush3.msra.mxu0 %v85_v16  ;;  %516 = vmatpush3.msra.mxu1 %v179_v21 }
  0x47   :  { %484 = vmatprep.subr.mxu0 %v84_v18  ;;  %517 = vmatprep.subr.mxu1 %v178_v23 }
  0x48   :  { %485 = vmatpush3.msra.mxu0 %v84_v18  ;;  %518 = vmatpush3.msra.mxu1 %v178_v23 }
  0x49   :  { %486 = vmatprep.subr.mxu0 %v83_v20  ;;  %519 = vmatprep.subr.mxu1 %v177_v25 }
  0x4a   :  { %487 = vmatpush3.msra.mxu0 %v83_v20  ;;  %520 = vmatpush3.msra.mxu1 %v177_v25 }
  0x4b   :  { %488 = vmatprep.subr.mxu0 %v82_v22  ;;  %521 = vmatprep.subr.mxu1 %v176_v27 }
  0x4c   :  { %489 = vmatpush3.msra.mxu0 %v82_v22  ;;  %522 = vmatpush3.msra.mxu1 %v176_v27 }
  0x4d   :  { %490 = vmatprep.subr.mxu0 %v81_v24  ;;  %523 = vmatprep.subr.mxu1 %v175_v29 }
  0x4e   :  { %491 = vmatpush3.msra.mxu0 %v81_v24  ;;  %524 = vmatpush3.msra.mxu1 %v175_v29 }
  0x4f   :  { %492 = vmatprep.subr.mxu0 %v80_v26  ;;  %525 = vmatprep.subr.mxu1 %v174_v32 }
  0x50   :  { %493 = vmatpush3.msra.mxu0 %v80_v26  ;;  %526 = vmatpush3.msra.mxu1 %v174_v32 }
  0x51   :  { %494 = vmatprep.subr.mxu0 %v79_v28  ;;  %527 = vmatprep.subr.mxu1 %v173_v34 }
  0x52   :  { %495 = vmatpush3.msra.mxu0 %v79_v28  ;;  %528 = vmatpush3.msra.mxu1 %v173_v34 }
  0x53   :  { %497 = vmatmul.mubr.f32.vlgmr.msra.gmra.mxu0 %v799_v30  ;;  %534 = vmatprep.subr.mxu0 %v278_v31 }
  0x54   :  { %535 = vmatpush3.msra.mxu0 %v278_v31  ;;  %529 = vmatprep.subr.mxu1 %v172_v36 }
  0x55   :  { %536 = vmatprep.subr.mxu0 %v277_v33  ;;  %530 = vmatpush3.msra.mxu1 %v172_v36 }
  0x56   :  { %537 = vmatpush3.msra.mxu0 %v277_v33  ;;  %531 = vmatprep.mubr.f32.mxu1 %v796_v5 }
  0x57   :  { %538 = vmatprep.subr.mxu0 %v276_v35  ;;  %532 = vmatmul.mubr.f32.vlgmr.msra.gmra.mxu1 %v799_v30 }
  0x58   :  { %539 = vmatpush3.msra.mxu0 %v276_v35  ;;  %566 = vmatprep.mubr.f32.mxu0 %v796_v5 }
  0x59   :  { %540 = vmatprep.subr.mxu0 %v275_v37 }
  0x5a   :  { %541 = vmatpush3.msra.mxu0 %v275_v37 }
  0x5b   :  { %542 = vmatprep.subr.mxu0 %v274_v38 }
  0x5c   :  { %543 = vmatpush3.msra.mxu0 %v274_v38 }
  0x5d   :  { %544 = vmatprep.subr.mxu0 %v273_v39 }
  0x5e   :  { %545 = vmatpush3.msra.mxu0 %v273_v39 }
  0x5f   :  { %546 = vmatprep.subr.mxu0 %v272_v40 }
  0x60   :  { %547 = vmatpush3.msra.mxu0 %v272_v40 }
  0x61   :  { %548 = vmatprep.subr.mxu0 %v271_v41 }
  0x62   :  { %549 = vmatpush3.msra.mxu0 %v271_v41 }
  0x63   :  { %550 = vmatprep.subr.mxu0 %v270_v42 }
  0x64   :  { %551 = vmatpush3.msra.mxu0 %v270_v42 }
  0x65   :  { %552 = vmatprep.subr.mxu0 %v269_v43 }
  0x66   :  { %553 = vmatpush3.msra.mxu0 %v269_v43 }
  0x67   :  { %554 = vmatprep.subr.mxu0 %v268_v44 }
  0x68   :  { %555 = vmatpush3.msra.mxu0 %v268_v44 }
  0x69   :  { %556 = vmatprep.subr.mxu0 %v267_v45 }
  0x6a   :  { %557 = vmatpush3.msra.mxu0 %v267_v45 }
  0x6b   :  { %558 = vmatprep.subr.mxu0 %v266_v46 }
  0x6c   :  { %559 = vmatpush3.msra.mxu0 %v266_v46 }
  0x6d   :  { %560 = vmatprep.subr.mxu0 %v265_v47 }
  0x6e   :  { %561 = vmatpush3.msra.mxu0 %v265_v47 }
  0x6f   :  { %562 = vmatprep.subr.mxu0 %v264_v48 }
  0x70   :  { %563 = vmatpush3.msra.mxu0 %v264_v48 }
  0x71   :  { %564 = vmatprep.subr.mxu0 %v263_v49 }
  0x72   :  { %565 = vmatpush3.msra.mxu0 %v263_v49 }
  0x73   :  { %567 = vmatmul.mubr.f32.vlgmr.msra.gmra.mxu0 %v799_v30 }
 0x113   :  { %v498_v50 = vpop.f32.mrf.mxu0 }
 0x114   :  { %v171_v51 = vmul.f32 0.17677669, %v498_v50 }
 0x115   :  { %v161_v52 = vpop.f32.mrf.mxu0 }
 0x116   :  { %355 = vst [vmem:[#allocation10 + $0x8] sm:$0xff] %v171_v51  ;;  %v170_v53 = vmul.f32 0.17677669, %v161_v52 }
 0x118   :  { %354 = vst [vmem:[#allocation10] sm:$0xff] %v170_v53 }
 0x119   :  { %669 = shalt.err (!%p666_p10)
}
 0x11a   :  { %371 = dma.vmem_to_hbm [thread:$0]  %s366_s3, 256, %s828_s4, [#allocation4], %s730_s26, %s730_s26, %s731_s27   ;;  %v533_v54 = vpop.f32.mrf.mxu1 }
 0x11b   :  { %357 = vst [vmem:[#allocation11 + $0x8] sm:$0xff] %v533_v54  ;;  %s678_s22 = scalar_lea.vmem %s378_s18, 256  ;;  %p683_p12 = scmp.lt.s32.totalorder %s378_s18, %s378_s18 }
 0x11c   :  { %v254_v55 = vpop.f32.mrf.mxu1  ;;  %p679_p11 = scmp.ne.s32.totalorder %s378_s18, %s678_s22  ;;  %p684_p13 = scmp.lt.s32.totalorder %s678_s22, %s678_s22 }
 0x11d   :  { %356 = vst [vmem:[#allocation11] sm:$0xff] %v254_v55 }
 0x11e   :  { %p685_p0 = por %p684_p13, %p683_p12 }
 0x120   :  { %p686_p1 = pnand %p685_p0, %p679_p11 }
 0x122   :  { %689 = shalt.err (!%p686_p1)
}
 0x123   :  { %383 = dma.vmem_to_hbm [thread:$0]  %s378_s18, 256, %s829_s5, [#allocation12], %s730_s26, %s730_s26, %s731_s27  }
 0x124   :  { %s736_s4 = smov [#allocation13]  }
 0x125   :  { %s389_s25 = sshll.u32 %s736_s4, 4  ;;  %s390_s25 = int_to_ptr.vmem [resolvable:$true] %s389_s25 }
 0x126   :  { %s698_s28 = scalar_lea.vmem %s390_s25, 256  ;;  %p703_p3 = scmp.lt.s32.totalorder %s390_s25, %s390_s25 }
 0x127   :  { %p699_p2 = scmp.ne.s32.totalorder %s390_s25, %s698_s28  ;;  %p704_p4 = scmp.lt.s32.totalorder %s698_s28, %s698_s28 }
 0x129   :  { %p705_p5 = por %p704_p4, %p703_p3 }
 0x12b   :  { %p706_p6 = pnand %p705_p5, %p699_p2 }
 0x133   :  { %v568_v56 = vpop.f32.mrf.mxu0 }
 0x134   :  { %359 = vst [vmem:[#allocation13 + $0x8] sm:$0xff] %v568_v56 }
 0x135   :  { %v345_v57 = vpop.f32.mrf.mxu0 }
 0x136   :  { %358 = vst [vmem:[#allocation13] sm:$0xff] %v345_v57 }
 0x137   :  { %709 = shalt.err (!%p706_p6)
}
 0x138   :  { %395 = dma.vmem_to_hbm [thread:$0]  %s390_s25, 256, %s830_s6, [#allocation12], %s730_s26, %s730_s26, %s731_s27  }
 0x139   :  { %724 = dma.done.wait [#allocation4], 256  }
 0x13a   :  { %725 = vsyncadd [#allocation4], 4294967040 }
 0x13b   :  { %726 = dma.done.wait [#allocation12], 512  }
 0x13c   :  { %727 = vsyncadd [#allocation12], 4294966784 }
 0x13d   :  { %405 = vsyncpa [#allocation3], 1 }
 0x13e   :  { %406 = vsyncpa [#allocation6], 1 }
 0x13f   :  { %407 = vsyncpa [#allocation9], 1 }
 0x140   :  { %408 = vsyncpa [#allocation4], 1 }
 0x141   :  { %409 = vsyncpa [#allocation12], 1 }

</bundles_post_ra>
